<compile_context>
chip_gen: v7x
topology: tpu7x:2x2x1
jax: 0.10.0
libtpu: 0.0.40
codegen_flags: <defaults>
</compile_context>

<pallas_src>
import functools
import math

import jax
import jax.numpy as jnp
from jax import lax
from jax.experimental import pallas as pl
from jax.experimental.pallas import tpu as pltpu


def _gqa_kernel(q_ref, k_ref, v_ref, o_ref, m_ref, l_ref, acc_ref, *,
                num_heads, head_dim, inv_scale):
    """One (batch, T-tile) x (K-tile) step of grouped-head attention.

    q_ref:   (1, T_tile, H*D)  input dtype
    k_ref:   (1, K_tile, H*D)  input dtype
    v_ref:   (1, K_tile, H*D)  input dtype
    o_ref:   (1, T_tile, H*D)  input dtype (lane-dense store)
    m_ref:   (H, T_tile, 1) f32  running row max     (scratch)
    l_ref:   (H, T_tile, 1) f32  running denominator (scratch)
    acc_ref: (T_tile, H*D)  f32  running numerator   (scratch)
    """
    kk = pl.program_id(2)

    @pl.when(kk == 0)
    def _init():
        m_ref[...] = jnp.full(m_ref.shape, -jnp.inf, dtype=jnp.float32)
        l_ref[...] = jnp.zeros(l_ref.shape, dtype=jnp.float32)
        acc_ref[...] = jnp.zeros(acc_ref.shape, dtype=jnp.float32)

    D = head_dim
    # Fold 1/sqrt(head_dim) into q once (T*D mults instead of T*K per step) and
    # keep the operands in the input dtype so the MXU consumes them natively.
    q = (q_ref[0] * inv_scale).astype(q_ref.dtype)    # (T_tile, H*D)
    k = k_ref[0]                                      # (K_tile, H*D)
    v = v_ref[0]                                      # (K_tile, H*D)

    for h in range(num_heads):                        # static unroll over heads
        q_h = q[:, h * D:(h + 1) * D]                 # (T_tile, D)
        k_h = k[:, h * D:(h + 1) * D]                 # (K_tile, D)
        v_h = v[:, h * D:(h + 1) * D]                 # (K_tile, D)

        # scores: contract the last axes directly (no k.T relayout), f32 acc.
        s = lax.dot_general(
            q_h, k_h,
            dimension_numbers=(((1,), (1,)), ((), ())),
            preferred_element_type=jnp.float32,
        )                                             # (T_tile, K_tile)

        # TODO(synk): optional `mask` path not implemented (module is exercised
        # with mask=None); a mask tile would be applied to `s` here.

        m_prev = m_ref[h]                             # (T_tile, 1)
        m_new = jnp.maximum(m_prev, jnp.max(s, axis=-1, keepdims=True))
        alpha = jnp.exp(m_prev - m_new)               # (T_tile, 1)
        p = jnp.exp(s - m_new)                        # (T_tile, K_tile) f32

        l_ref[h] = alpha * l_ref[h] + jnp.sum(p, axis=-1, keepdims=True)
        m_ref[h] = m_new

        pv = jnp.dot(p.astype(v_h.dtype), v_h,
                     preferred_element_type=jnp.float32)      # (T_tile, D)
        acc_ref[:, h * D:(h + 1) * D] = (
            alpha * acc_ref[:, h * D:(h + 1) * D] + pv)

    @pl.when(kk == pl.num_programs(2) - 1)
    def _finalize():
        # Normalize once, after the PV matmuls (reciprocal goes to the EUP),
        # then emit a single lane-dense (T_tile, H*D) store.
        for h in range(num_heads):
            inv_l = pl.reciprocal(l_ref[h], approx=True)      # (T_tile, 1)
            acc_ref[:, h * D:(h + 1) * D] = (
                acc_ref[:, h * D:(h + 1) * D] * inv_l)
        o_ref[0] = acc_ref[...].astype(o_ref.dtype)


def _pick_tile(dim, target):
    """Largest multiple-of-8 divisor of `dim` <= target, else the full dim."""
    if dim <= target:
        return dim
    for cand in range(target, 7, -1):
        if dim % cand == 0 and cand % 8 == 0:
            return cand
    return dim


def group_query_attention(query, key, value, *, head_dim, num_heads, group_size,
                          t_tile=None, k_tile=None):
    """Pallas implementation of GroupQueryAttention.forward (mask=None).

    query: (B, T, num_heads*head_dim)
    key:   (B, K, num_heads, head_dim)
    value: (B, K, num_heads, head_dim)
    returns (B, T, num_heads*head_dim)

    Note: `group_size` only affects the intermediate view in the PyTorch module
    (each query head attends to the key/value head of the same index — KV heads
    == Q heads), so it only appears here as a divisibility requirement.
    """
    B, T, HD = query.shape
    Kseq = key.shape[1]
    assert HD == num_heads * head_dim
    assert T % group_size == 0              # mirrors the .view() requirement

    # (B, K, H, D) -> (B, K, H*D): contiguous reshape, no transpose / HBM pass.
    k2 = key.reshape(B, Kseq, HD)
    v2 = value.reshape(B, Kseq, HD)

    # Tile sizes: keep the MXU M-dim fat while bounding per-step VMEM; targets
    # stay well under the 32 MiB scoped-VMEM default (double-buffered q/k/v/o
    # tiles) and v7x's 64 MiB physical VMEM.  Small shapes fall back to the
    # full extent (still satisfies the (8,128) block constraint).
    if t_tile is None:
        t_tile = _pick_tile(T, 256)
    if k_tile is None:
        k_tile = _pick_tile(Kseq, 512)

    grid = (B, T // t_tile, Kseq // k_tile)
    inv_scale = 1.0 / math.sqrt(float(head_dim))

    kernel = functools.partial(
        _gqa_kernel, num_heads=num_heads, head_dim=head_dim, inv_scale=inv_scale)

    itemsize = jnp.dtype(query.dtype).itemsize
    cost = pl.CostEstimate(
        flops=4 * B * num_heads * T * Kseq * head_dim,
        transcendentals=B * num_heads * T * Kseq,
        bytes_accessed=(query.size + k2.size + v2.size + B * T * HD) * itemsize,
    )

    return pl.pallas_call(
        kernel,
        out_shape=jax.ShapeDtypeStruct((B, T, HD), query.dtype),
        grid_spec=pltpu.PrefetchScalarGridSpec(
            num_scalar_prefetch=0,
            grid=grid,
            in_specs=[
                pl.BlockSpec((1, t_tile, HD), lambda b, t, kk: (b, t, 0)),
                pl.BlockSpec((1, k_tile, HD), lambda b, t, kk: (b, kk, 0)),
                pl.BlockSpec((1, k_tile, HD), lambda b, t, kk: (b, kk, 0)),
            ],
            out_specs=pl.BlockSpec((1, t_tile, HD), lambda b, t, kk: (b, t, 0)),
            scratch_shapes=[
                pltpu.VMEM((num_heads, t_tile, 1), jnp.float32),  # running max
                pltpu.VMEM((num_heads, t_tile, 1), jnp.float32),  # running denom
                pltpu.VMEM((t_tile, HD), jnp.float32),            # numerator acc
            ],
        ),
        compiler_params=pltpu.CompilerParams(
            dimension_semantics=("parallel", "parallel", "arbitrary"),
        ),
        cost_estimate=cost,
    )(query, k2, v2)


def _reference(query, key, value, *, head_dim, num_heads, group_size):
    """Pure-JAX transliteration of the PyTorch forward (mask=None)."""
    B, T, _ = query.shape
    gq = query.reshape(B, T // group_size, group_size, num_heads, head_dim)
    scores = jnp.einsum("btghd,bkhd->btghk", gq, key) / jnp.sqrt(
        jnp.float32(head_dim))
    attn = jax.nn.softmax(scores, axis=-1)
    out = jnp.einsum("btghk,bkhd->btghd", attn, value)
    return out.reshape(B, T, -1)


if __name__ == "__main__":
    head_dim = 32
    num_heads = 4
    group_size = 2
    B, T, Kseq = 2, 8, 8

    key0 = jax.random.PRNGKey(0)
    kq, kk, kv = jax.random.split(key0, 3)
    query = jax.random.normal(kq, (B, T, num_heads * head_dim), dtype=jnp.float32)
    key = jax.random.normal(kk, (B, Kseq, num_heads, head_dim), dtype=jnp.float32)
    value = jax.random.normal(kv, (B, Kseq, num_heads, head_dim), dtype=jnp.float32)

    out = group_query_attention(
        query, key, value,
        head_dim=head_dim, num_heads=num_heads, group_size=group_size,
    )
    out = jax.block_until_ready(out)

    ref = _reference(
        query, key, value,
        head_dim=head_dim, num_heads=num_heads, group_size=group_size,
    )
    assert out.shape == (B, T, num_heads * head_dim)
    # tolerance leaves headroom for the EUP approximate reciprocal used in the
    # epilogue normalization and the online-softmax reassociation.
    assert jnp.allclose(out, ref, atol=2e-3, rtol=2e-3), float(
        jnp.max(jnp.abs(out - ref)))

    print("KERNEL_OK")
</pallas_src>

<mosaic_0001>
module attributes {stable_mosaic.version = 11 : i64} {
  func.func @_gqa_kernel(%arg0: i32, %arg1: i32, %arg2: i32, %arg3: memref<1x8x128xf32, #tpu.memory_space<vmem>>, %arg4: memref<1x8x128xf32, #tpu.memory_space<vmem>>, %arg5: memref<1x8x128xf32, #tpu.memory_space<vmem>>, %arg6: memref<1x8x128xf32, #tpu.memory_space<vmem>>, %arg7: memref<4x8x1xf32, #tpu.memory_space<vmem>>, %arg8: memref<4x8x1xf32, #tpu.memory_space<vmem>>, %arg9: memref<8x128xf32, #tpu.memory_space<vmem>>) attributes {dimension_semantics = [#tpu.dimension_semantics<parallel>, #tpu.dimension_semantics<parallel>, #tpu.dimension_semantics<arbitrary>], iteration_bounds = array<i64: 2, 1, 1>, scalar_prefetch = 0 : i64, scratch_operands = 3 : i64, tpu.core_type = #tpu.core_type<tc>, window_params = [{transform_indices = @transform_0, window_bounds = array<i64: 1, 8, 128>}, {transform_indices = @transform_1, window_bounds = array<i64: 1, 8, 128>}, {transform_indices = @transform_2, window_bounds = array<i64: 1, 8, 128>}, {transform_indices = @transform_3, window_bounds = array<i64: 1, 8, 128>}]} {
    %c0_i32 = arith.constant 0 : i32
    %0 = arith.cmpi eq, %arg2, %c0_i32 : i32
    %1 = arith.extui %0 : i1 to i32
    %c0_i32_0 = arith.constant 0 : i32
    %2 = arith.cmpi ne, %1, %c0_i32_0 : i32
    scf.if %2 {
      %cst_85 = arith.constant 0xFF800000 : f32
      %142 = vector.broadcast %cst_85 : f32 to vector<4x8x1xf32>
      %c0_86 = arith.constant 0 : index
      %c0_87 = arith.constant 0 : index
      %c0_88 = arith.constant 0 : index
      %143 = vector.load %arg7[%c0_86, %c0_87, %c0_88] : memref<4x8x1xf32, #tpu.memory_space<vmem>>, vector<4x8x1xf32>
      tpu.vector_store %arg7[%c0_86, %c0_87, %c0_88], %142 {strides = array<i32>} : memref<4x8x1xf32, #tpu.memory_space<vmem>>, vector<4x8x1xf32>,
      %cst_89 = arith.constant 0.000000e+00 : f32
      %144 = vector.broadcast %cst_89 : f32 to vector<4x8x1xf32>
      %c0_90 = arith.constant 0 : index
      %c0_91 = arith.constant 0 : index
      %c0_92 = arith.constant 0 : index
      %145 = vector.load %arg8[%c0_90, %c0_91, %c0_92] : memref<4x8x1xf32, #tpu.memory_space<vmem>>, vector<4x8x1xf32>
      tpu.vector_store %arg8[%c0_90, %c0_91, %c0_92], %144 {strides = array<i32>} : memref<4x8x1xf32, #tpu.memory_space<vmem>>, vector<4x8x1xf32>,
      %cst_93 = arith.constant 0.000000e+00 : f32
      %146 = vector.broadcast %cst_93 : f32 to vector<8x128xf32>
      %c0_94 = arith.constant 0 : index
      %c0_95 = arith.constant 0 : index
      %147 = vector.load %arg9[%c0_94, %c0_95] : memref<8x128xf32, #tpu.memory_space<vmem>>, vector<8x128xf32>
      tpu.vector_store %arg9[%c0_94, %c0_95], %146 {strides = array<i32>} : memref<8x128xf32, #tpu.memory_space<vmem>>, vector<8x128xf32>,
    } else {
    }
    %c0 = arith.constant 0 : index
    %c0_1 = arith.constant 0 : index
    %c0_2 = arith.constant 0 : index
    %3 = vector.load %arg3[%c0, %c0_1, %c0_2] : memref<1x8x128xf32, #tpu.memory_space<vmem>>, vector<1x8x128xf32>
    %4 = vector.shape_cast %3 : vector<1x8x128xf32> to vector<8x128xf32>
    %cst = arith.constant 0.176776692 : f32
    %5 = vector.broadcast %cst : f32 to vector<8x128xf32>
    %6 = arith.mulf %4, %5 : vector<8x128xf32>
    %c0_3 = arith.constant 0 : index
    %c0_4 = arith.constant 0 : index
    %c0_5 = arith.constant 0 : index
    %7 = vector.load %arg4[%c0_3, %c0_4, %c0_5] : memref<1x8x128xf32, #tpu.memory_space<vmem>>, vector<1x8x128xf32>
    %8 = vector.shape_cast %7 : vector<1x8x128xf32> to vector<8x128xf32>
    %c0_6 = arith.constant 0 : index
    %c0_7 = arith.constant 0 : index
    %c0_8 = arith.constant 0 : index
    %9 = vector.load %arg5[%c0_6, %c0_7, %c0_8] : memref<1x8x128xf32, #tpu.memory_space<vmem>>, vector<1x8x128xf32>
    %10 = vector.shape_cast %9 : vector<1x8x128xf32> to vector<8x128xf32>
    %11 = vector.extract_strided_slice %6 {offsets = [0, 0], sizes = [8, 32], strides = [1, 1]} : vector<8x128xf32> to vector<8x32xf32>
    %12 = vector.extract_strided_slice %8 {offsets = [0, 0], sizes = [8, 32], strides = [1, 1]} : vector<8x128xf32> to vector<8x32xf32>
    %13 = vector.extract_strided_slice %10 {offsets = [0, 0], sizes = [8, 32], strides = [1, 1]} : vector<8x128xf32> to vector<8x32xf32>
    %cst_9 = arith.constant dense<0.000000e+00> : vector<8x8xf32>
    %14 = tpu.matmul %11, %12, %cst_9 {dimension_numbers = #tpu.dot_dimension_numbers<[1], [1], [0], [0], [0, 0, 1, 0], [], []>} : vector<8x32xf32>, vector<8x32xf32>, vector<8x8xf32> -> vector<8x8xf32>
    %c0_10 = arith.constant 0 : index
    %c0_11 = arith.constant 0 : index
    %c0_12 = arith.constant 0 : index
    %15 = vector.load %arg7[%c0_10, %c0_11, %c0_12] : memref<4x8x1xf32, #tpu.memory_space<vmem>>, vector<1x8x1xf32>
    %16 = vector.shape_cast %15 : vector<1x8x1xf32> to vector<8x1xf32>
    %cst_13 = arith.constant dense<0xFF800000> : vector<8xf32>
    %17 = vector.multi_reduction <maximumf>, %14, %cst_13 [1] : vector<8x8xf32> to vector<8xf32>
    %18 = vector.shape_cast %17 : vector<8xf32> to vector<8x1xf32>
    %19 = arith.maximumf %16, %18 : vector<8x1xf32>
    %20 = arith.subf %16, %19 : vector<8x1xf32>
    %21 = math.exp %20 : vector<8x1xf32>
    %22 = vector.broadcast %19 : vector<8x1xf32> to vector<8x8xf32>
    %23 = arith.subf %14, %22 : vector<8x8xf32>
    %24 = math.exp %23 : vector<8x8xf32>
    %c0_14 = arith.constant 0 : index
    %c0_15 = arith.constant 0 : index
    %c0_16 = arith.constant 0 : index
    %25 = vector.load %arg8[%c0_14, %c0_15, %c0_16] : memref<4x8x1xf32, #tpu.memory_space<vmem>>, vector<1x8x1xf32>
    %26 = vector.shape_cast %25 : vector<1x8x1xf32> to vector<8x1xf32>
    %27 = arith.mulf %21, %26 : vector<8x1xf32>
    %cst_17 = arith.constant dense<0.000000e+00> : vector<8xf32>
    %28 = vector.multi_reduction <add>, %24, %cst_17 [1] : vector<8x8xf32> to vector<8xf32>
    %29 = vector.shape_cast %28 : vector<8xf32> to vector<8x1xf32>
    %30 = arith.addf %27, %29 : vector<8x1xf32>
    %c0_18 = arith.constant 0 : index
    %c0_19 = arith.constant 0 : index
    %c0_20 = arith.constant 0 : index
    %31 = vector.load %arg8[%c0_18, %c0_19, %c0_20] : memref<4x8x1xf32, #tpu.memory_space<vmem>>, vector<1x8x1xf32>
    %32 = vector.shape_cast %31 : vector<1x8x1xf32> to vector<8x1xf32>
    %33 = vector.shape_cast %30 : vector<8x1xf32> to vector<1x8x1xf32>
    tpu.vector_store %arg8[%c0_18, %c0_19, %c0_20], %33 {strides = array<i32>} : memref<4x8x1xf32, #tpu.memory_space<vmem>>, vector<1x8x1xf32>,
    %c0_21 = arith.constant 0 : index
    %c0_22 = arith.constant 0 : index
    %c0_23 = arith.constant 0 : index
    %34 = vector.load %arg7[%c0_21, %c0_22, %c0_23] : memref<4x8x1xf32, #tpu.memory_space<vmem>>, vector<1x8x1xf32>
    %35 = vector.shape_cast %34 : vector<1x8x1xf32> to vector<8x1xf32>
    %36 = vector.shape_cast %19 : vector<8x1xf32> to vector<1x8x1xf32>
    tpu.vector_store %arg7[%c0_21, %c0_22, %c0_23], %36 {strides = array<i32>} : memref<4x8x1xf32, #tpu.memory_space<vmem>>, vector<1x8x1xf32>,
    %cst_24 = arith.constant dense<0.000000e+00> : vector<8x32xf32>
    %37 = tpu.matmul %24, %13, %cst_24 {dimension_numbers = #tpu.dot_dimension_numbers<[1], [0], [0], [1], [0, 0, 1, 1], [], []>} : vector<8x8xf32>, vector<8x32xf32>, vector<8x32xf32> -> vector<8x32xf32>
    %c0_25 = arith.constant 0 : index
    %c0_26 = arith.constant 0 : index
    %38 = vector.load %arg9[%c0_25, %c0_26] : memref<8x128xf32, #tpu.memory_space<vmem>>, vector<8x32xf32>
    %39 = vector.broadcast %21 : vector<8x1xf32> to vector<8x32xf32>
    %40 = arith.mulf %39, %38 : vector<8x32xf32>
    %41 = arith.addf %40, %37 : vector<8x32xf32>
    %c0_27 = arith.constant 0 : index
    %c0_28 = arith.constant 0 : index
    %42 = vector.load %arg9[%c0_27, %c0_28] : memref<8x128xf32, #tpu.memory_space<vmem>>, vector<8x32xf32>
    tpu.vector_store %arg9[%c0_27, %c0_28], %41 {strides = array<i32>} : memref<8x128xf32, #tpu.memory_space<vmem>>, vector<8x32xf32>,
    %43 = vector.extract_strided_slice %6 {offsets = [0, 32], sizes = [8, 32], strides = [1, 1]} : vector<8x128xf32> to vector<8x32xf32>
    %44 = vector.extract_strided_slice %8 {offsets = [0, 32], sizes = [8, 32], strides = [1, 1]} : vector<8x128xf32> to vector<8x32xf32>
    %45 = vector.extract_strided_slice %10 {offsets = [0, 32], sizes = [8, 32], strides = [1, 1]} : vector<8x128xf32> to vector<8x32xf32>
    %cst_29 = arith.constant dense<0.000000e+00> : vector<8x8xf32>
    %46 = tpu.matmul %43, %44, %cst_29 {dimension_numbers = #tpu.dot_dimension_numbers<[1], [1], [0], [0], [0, 0, 1, 0], [], []>} : vector<8x32xf32>, vector<8x32xf32>, vector<8x8xf32> -> vector<8x8xf32>
    %c1 = arith.constant 1 : index
    %c0_30 = arith.constant 0 : index
    %c0_31 = arith.constant 0 : index
    %47 = vector.load %arg7[%c1, %c0_30, %c0_31] : memref<4x8x1xf32, #tpu.memory_space<vmem>>, vector<1x8x1xf32>
    %48 = vector.shape_cast %47 : vector<1x8x1xf32> to vector<8x1xf32>
    %cst_32 = arith.constant dense<0xFF800000> : vector<8xf32>
    %49 = vector.multi_reduction <maximumf>, %46, %cst_32 [1] : vector<8x8xf32> to vector<8xf32>
    %50 = vector.shape_cast %49 : vector<8xf32> to vector<8x1xf32>
    %51 = arith.maximumf %48, %50 : vector<8x1xf32>
    %52 = arith.subf %48, %51 : vector<8x1xf32>
    %53 = math.exp %52 : vector<8x1xf32>
    %54 = vector.broadcast %51 : vector<8x1xf32> to vector<8x8xf32>
    %55 = arith.subf %46, %54 : vector<8x8xf32>
    %56 = math.exp %55 : vector<8x8xf32>
    %c1_33 = arith.constant 1 : index
    %c0_34 = arith.constant 0 : index
    %c0_35 = arith.constant 0 : index
    %57 = vector.load %arg8[%c1_33, %c0_34, %c0_35] : memref<4x8x1xf32, #tpu.memory_space<vmem>>, vector<1x8x1xf32>
    %58 = vector.shape_cast %57 : vector<1x8x1xf32> to vector<8x1xf32>
    %59 = arith.mulf %53, %58 : vector<8x1xf32>
    %cst_36 = arith.constant dense<0.000000e+00> : vector<8xf32>
    %60 = vector.multi_reduction <add>, %56, %cst_36 [1] : vector<8x8xf32> to vector<8xf32>
    %61 = vector.shape_cast %60 : vector<8xf32> to vector<8x1xf32>
    %62 = arith.addf %59, %61 : vector<8x1xf32>
    %c1_37 = arith.constant 1 : index
    %c0_38 = arith.constant 0 : index
    %c0_39 = arith.constant 0 : index
    %63 = vector.load %arg8[%c1_37, %c0_38, %c0_39] : memref<4x8x1xf32, #tpu.memory_space<vmem>>, vector<1x8x1xf32>
    %64 = vector.shape_cast %63 : vector<1x8x1xf32> to vector<8x1xf32>
    %65 = vector.shape_cast %62 : vector<8x1xf32> to vector<1x8x1xf32>
    tpu.vector_store %arg8[%c1_37, %c0_38, %c0_39], %65 {strides = array<i32>} : memref<4x8x1xf32, #tpu.memory_space<vmem>>, vector<1x8x1xf32>,
    %c1_40 = arith.constant 1 : index
    %c0_41 = arith.constant 0 : index
    %c0_42 = arith.constant 0 : index
    %66 = vector.load %arg7[%c1_40, %c0_41, %c0_42] : memref<4x8x1xf32, #tpu.memory_space<vmem>>, vector<1x8x1xf32>
    %67 = vector.shape_cast %66 : vector<1x8x1xf32> to vector<8x1xf32>
    %68 = vector.shape_cast %51 : vector<8x1xf32> to vector<1x8x1xf32>
    tpu.vector_store %arg7[%c1_40, %c0_41, %c0_42], %68 {strides = array<i32>} : memref<4x8x1xf32, #tpu.memory_space<vmem>>, vector<1x8x1xf32>,
    %cst_43 = arith.constant dense<0.000000e+00> : vector<8x32xf32>
    %69 = tpu.matmul %56, %45, %cst_43 {dimension_numbers = #tpu.dot_dimension_numbers<[1], [0], [0], [1], [0, 0, 1, 1], [], []>} : vector<8x8xf32>, vector<8x32xf32>, vector<8x32xf32> -> vector<8x32xf32>
    %c0_44 = arith.constant 0 : index
    %c32 = arith.constant 32 : index
    %70 = vector.load %arg9[%c0_44, %c32] : memref<8x128xf32, #tpu.memory_space<vmem>>, vector<8x32xf32>
    %71 = vector.broadcast %53 : vector<8x1xf32> to vector<8x32xf32>
    %72 = arith.mulf %71, %70 : vector<8x32xf32>
    %73 = arith.addf %72, %69 : vector<8x32xf32>
    %c0_45 = arith.constant 0 : index
    %c32_46 = arith.constant 32 : index
    %74 = vector.load %arg9[%c0_45, %c32_46] : memref<8x128xf32, #tpu.memory_space<vmem>>, vector<8x32xf32>
    tpu.vector_store %arg9[%c0_45, %c32_46], %73 {strides = array<i32>} : memref<8x128xf32, #tpu.memory_space<vmem>>, vector<8x32xf32>,
    %75 = vector.extract_strided_slice %6 {offsets = [0, 64], sizes = [8, 32], strides = [1, 1]} : vector<8x128xf32> to vector<8x32xf32>
    %76 = vector.extract_strided_slice %8 {offsets = [0, 64], sizes = [8, 32], strides = [1, 1]} : vector<8x128xf32> to vector<8x32xf32>
    %77 = vector.extract_strided_slice %10 {offsets = [0, 64], sizes = [8, 32], strides = [1, 1]} : vector<8x128xf32> to vector<8x32xf32>
    %cst_47 = arith.constant dense<0.000000e+00> : vector<8x8xf32>
    %78 = tpu.matmul %75, %76, %cst_47 {dimension_numbers = #tpu.dot_dimension_numbers<[1], [1], [0], [0], [0, 0, 1, 0], [], []>} : vector<8x32xf32>, vector<8x32xf32>, vector<8x8xf32> -> vector<8x8xf32>
    %c2 = arith.constant 2 : index
    %c0_48 = arith.constant 0 : index
    %c0_49 = arith.constant 0 : index
    %79 = vector.load %arg7[%c2, %c0_48, %c0_49] : memref<4x8x1xf32, #tpu.memory_space<vmem>>, vector<1x8x1xf32>
    %80 = vector.shape_cast %79 : vector<1x8x1xf32> to vector<8x1xf32>
    %cst_50 = arith.constant dense<0xFF800000> : vector<8xf32>
    %81 = vector.multi_reduction <maximumf>, %78, %cst_50 [1] : vector<8x8xf32> to vector<8xf32>
    %82 = vector.shape_cast %81 : vector<8xf32> to vector<8x1xf32>
    %83 = arith.maximumf %80, %82 : vector<8x1xf32>
    %84 = arith.subf %80, %83 : vector<8x1xf32>
    %85 = math.exp %84 : vector<8x1xf32>
    %86 = vector.broadcast %83 : vector<8x1xf32> to vector<8x8xf32>
    %87 = arith.subf %78, %86 : vector<8x8xf32>
    %88 = math.exp %87 : vector<8x8xf32>
    %c2_51 = arith.constant 2 : index
    %c0_52 = arith.constant 0 : index
    %c0_53 = arith.constant 0 : index
    %89 = vector.load %arg8[%c2_51, %c0_52, %c0_53] : memref<4x8x1xf32, #tpu.memory_space<vmem>>, vector<1x8x1xf32>
    %90 = vector.shape_cast %89 : vector<1x8x1xf32> to vector<8x1xf32>
    %91 = arith.mulf %85, %90 : vector<8x1xf32>
    %cst_54 = arith.constant dense<0.000000e+00> : vector<8xf32>
    %92 = vector.multi_reduction <add>, %88, %cst_54 [1] : vector<8x8xf32> to vector<8xf32>
    %93 = vector.shape_cast %92 : vector<8xf32> to vector<8x1xf32>
    %94 = arith.addf %91, %93 : vector<8x1xf32>
    %c2_55 = arith.constant 2 : index
    %c0_56 = arith.constant 0 : index
    %c0_57 = arith.constant 0 : index
    %95 = vector.load %arg8[%c2_55, %c0_56, %c0_57] : memref<4x8x1xf32, #tpu.memory_space<vmem>>, vector<1x8x1xf32>
    %96 = vector.shape_cast %95 : vector<1x8x1xf32> to vector<8x1xf32>
    %97 = vector.shape_cast %94 : vector<8x1xf32> to vector<1x8x1xf32>
    tpu.vector_store %arg8[%c2_55, %c0_56, %c0_57], %97 {strides = array<i32>} : memref<4x8x1xf32, #tpu.memory_space<vmem>>, vector<1x8x1xf32>,
    %c2_58 = arith.constant 2 : index
    %c0_59 = arith.constant 0 : index
    %c0_60 = arith.constant 0 : index
    %98 = vector.load %arg7[%c2_58, %c0_59, %c0_60] : memref<4x8x1xf32, #tpu.memory_space<vmem>>, vector<1x8x1xf32>
    %99 = vector.shape_cast %98 : vector<1x8x1xf32> to vector<8x1xf32>
    %100 = vector.shape_cast %83 : vector<8x1xf32> to vector<1x8x1xf32>
    tpu.vector_store %arg7[%c2_58, %c0_59, %c0_60], %100 {strides = array<i32>} : memref<4x8x1xf32, #tpu.memory_space<vmem>>, vector<1x8x1xf32>,
    %cst_61 = arith.constant dense<0.000000e+00> : vector<8x32xf32>
    %101 = tpu.matmul %88, %77, %cst_61 {dimension_numbers = #tpu.dot_dimension_numbers<[1], [0], [0], [1], [0, 0, 1, 1], [], []>} : vector<8x8xf32>, vector<8x32xf32>, vector<8x32xf32> -> vector<8x32xf32>
    %c0_62 = arith.constant 0 : index
    %c64 = arith.constant 64 : index
    %102 = vector.load %arg9[%c0_62, %c64] : memref<8x128xf32, #tpu.memory_space<vmem>>, vector<8x32xf32>
    %103 = vector.broadcast %85 : vector<8x1xf32> to vector<8x32xf32>
    %104 = arith.mulf %103, %102 : vector<8x32xf32>
    %105 = arith.addf %104, %101 : vector<8x32xf32>
    %c0_63 = arith.constant 0 : index
    %c64_64 = arith.constant 64 : index
    %106 = vector.load %arg9[%c0_63, %c64_64] : memref<8x128xf32, #tpu.memory_space<vmem>>, vector<8x32xf32>
    tpu.vector_store %arg9[%c0_63, %c64_64], %105 {strides = array<i32>} : memref<8x128xf32, #tpu.memory_space<vmem>>, vector<8x32xf32>,
    %107 = vector.extract_strided_slice %6 {offsets = [0, 96], sizes = [8, 32], strides = [1, 1]} : vector<8x128xf32> to vector<8x32xf32>
    %108 = vector.extract_strided_slice %8 {offsets = [0, 96], sizes = [8, 32], strides = [1, 1]} : vector<8x128xf32> to vector<8x32xf32>
    %109 = vector.extract_strided_slice %10 {offsets = [0, 96], sizes = [8, 32], strides = [1, 1]} : vector<8x128xf32> to vector<8x32xf32>
    %cst_65 = arith.constant dense<0.000000e+00> : vector<8x8xf32>
    %110 = tpu.matmul %107, %108, %cst_65 {dimension_numbers = #tpu.dot_dimension_numbers<[1], [1], [0], [0], [0, 0, 1, 0], [], []>} : vector<8x32xf32>, vector<8x32xf32>, vector<8x8xf32> -> vector<8x8xf32>
    %c3 = arith.constant 3 : index
    %c0_66 = arith.constant 0 : index
    %c0_67 = arith.constant 0 : index
    %111 = vector.load %arg7[%c3, %c0_66, %c0_67] : memref<4x8x1xf32, #tpu.memory_space<vmem>>, vector<1x8x1xf32>
    %112 = vector.shape_cast %111 : vector<1x8x1xf32> to vector<8x1xf32>
    %cst_68 = arith.constant dense<0xFF800000> : vector<8xf32>
    %113 = vector.multi_reduction <maximumf>, %110, %cst_68 [1] : vector<8x8xf32> to vector<8xf32>
    %114 = vector.shape_cast %113 : vector<8xf32> to vector<8x1xf32>
    %115 = arith.maximumf %112, %114 : vector<8x1xf32>
    %116 = arith.subf %112, %115 : vector<8x1xf32>
    %117 = math.exp %116 : vector<8x1xf32>
    %118 = vector.broadcast %115 : vector<8x1xf32> to vector<8x8xf32>
    %119 = arith.subf %110, %118 : vector<8x8xf32>
    %120 = math.exp %119 : vector<8x8xf32>
    %c3_69 = arith.constant 3 : index
    %c0_70 = arith.constant 0 : index
    %c0_71 = arith.constant 0 : index
    %121 = vector.load %arg8[%c3_69, %c0_70, %c0_71] : memref<4x8x1xf32, #tpu.memory_space<vmem>>, vector<1x8x1xf32>
    %122 = vector.shape_cast %121 : vector<1x8x1xf32> to vector<8x1xf32>
    %123 = arith.mulf %117, %122 : vector<8x1xf32>
    %cst_72 = arith.constant dense<0.000000e+00> : vector<8xf32>
    %124 = vector.multi_reduction <add>, %120, %cst_72 [1] : vector<8x8xf32> to vector<8xf32>
    %125 = vector.shape_cast %124 : vector<8xf32> to vector<8x1xf32>
    %126 = arith.addf %123, %125 : vector<8x1xf32>
    %c3_73 = arith.constant 3 : index
    %c0_74 = arith.constant 0 : index
    %c0_75 = arith.constant 0 : index
    %127 = vector.load %arg8[%c3_73, %c0_74, %c0_75] : memref<4x8x1xf32, #tpu.memory_space<vmem>>, vector<1x8x1xf32>
    %128 = vector.shape_cast %127 : vector<1x8x1xf32> to vector<8x1xf32>
    %129 = vector.shape_cast %126 : vector<8x1xf32> to vector<1x8x1xf32>
    tpu.vector_store %arg8[%c3_73, %c0_74, %c0_75], %129 {strides = array<i32>} : memref<4x8x1xf32, #tpu.memory_space<vmem>>, vector<1x8x1xf32>,
    %c3_76 = arith.constant 3 : index
    %c0_77 = arith.constant 0 : index
    %c0_78 = arith.constant 0 : index
    %130 = vector.load %arg7[%c3_76, %c0_77, %c0_78] : memref<4x8x1xf32, #tpu.memory_space<vmem>>, vector<1x8x1xf32>
    %131 = vector.shape_cast %130 : vector<1x8x1xf32> to vector<8x1xf32>
    %132 = vector.shape_cast %115 : vector<8x1xf32> to vector<1x8x1xf32>
    tpu.vector_store %arg7[%c3_76, %c0_77, %c0_78], %132 {strides = array<i32>} : memref<4x8x1xf32, #tpu.memory_space<vmem>>, vector<1x8x1xf32>,
    %cst_79 = arith.constant dense<0.000000e+00> : vector<8x32xf32>
    %133 = tpu.matmul %120, %109, %cst_79 {dimension_numbers = #tpu.dot_dimension_numbers<[1], [0], [0], [1], [0, 0, 1, 1], [], []>} : vector<8x8xf32>, vector<8x32xf32>, vector<8x32xf32> -> vector<8x32xf32>
    %c0_80 = arith.constant 0 : index
    %c96 = arith.constant 96 : index
    %134 = vector.load %arg9[%c0_80, %c96] : memref<8x128xf32, #tpu.memory_space<vmem>>, vector<8x32xf32>
    %135 = vector.broadcast %117 : vector<8x1xf32> to vector<8x32xf32>
    %136 = arith.mulf %135, %134 : vector<8x32xf32>
    %137 = arith.addf %136, %133 : vector<8x32xf32>
    %c0_81 = arith.constant 0 : index
    %c96_82 = arith.constant 96 : index
    %138 = vector.load %arg9[%c0_81, %c96_82] : memref<8x128xf32, #tpu.memory_space<vmem>>, vector<8x32xf32>
    tpu.vector_store %arg9[%c0_81, %c96_82], %137 {strides = array<i32>} : memref<8x128xf32, #tpu.memory_space<vmem>>, vector<8x32xf32>,
    %c0_i32_83 = arith.constant 0 : i32
    %139 = arith.cmpi eq, %arg2, %c0_i32_83 : i32
    %140 = arith.extui %139 : i1 to i32
    %c0_i32_84 = arith.constant 0 : i32
    %141 = arith.cmpi ne, %140, %c0_i32_84 : i32
    scf.if %141 {
      %c0_85 = arith.constant 0 : index
      %c0_86 = arith.constant 0 : index
      %c0_87 = arith.constant 0 : index
      %142 = vector.load %arg8[%c0_85, %c0_86, %c0_87] : memref<4x8x1xf32, #tpu.memory_space<vmem>>, vector<1x8x1xf32>
      %143 = vector.shape_cast %142 : vector<1x8x1xf32> to vector<8x1xf32>
      %144 = tpu.reciprocal %143 {approx = true} : vector<8x1xf32> -> vector<8x1xf32>
      %c0_88 = arith.constant 0 : index
      %c0_89 = arith.constant 0 : index
      %145 = vector.load %arg9[%c0_88, %c0_89] : memref<8x128xf32, #tpu.memory_space<vmem>>, vector<8x32xf32>
      %146 = vector.broadcast %144 : vector<8x1xf32> to vector<8x32xf32>
      %147 = arith.mulf %145, %146 : vector<8x32xf32>
      %c0_90 = arith.constant 0 : index
      %c0_91 = arith.constant 0 : index
      %148 = vector.load %arg9[%c0_90, %c0_91] : memref<8x128xf32, #tpu.memory_space<vmem>>, vector<8x32xf32>
      tpu.vector_store %arg9[%c0_90, %c0_91], %147 {strides = array<i32>} : memref<8x128xf32, #tpu.memory_space<vmem>>, vector<8x32xf32>,
      %c1_92 = arith.constant 1 : index
      %c0_93 = arith.constant 0 : index
      %c0_94 = arith.constant 0 : index
      %149 = vector.load %arg8[%c1_92, %c0_93, %c0_94] : memref<4x8x1xf32, #tpu.memory_space<vmem>>, vector<1x8x1xf32>
      %150 = vector.shape_cast %149 : vector<1x8x1xf32> to vector<8x1xf32>
      %151 = tpu.reciprocal %150 {approx = true} : vector<8x1xf32> -> vector<8x1xf32>
      %c0_95 = arith.constant 0 : index
      %c32_96 = arith.constant 32 : index
      %152 = vector.load %arg9[%c0_95, %c32_96] : memref<8x128xf32, #tpu.memory_space<vmem>>, vector<8x32xf32>
      %153 = vector.broadcast %151 : vector<8x1xf32> to vector<8x32xf32>
      %154 = arith.mulf %152, %153 : vector<8x32xf32>
      %c0_97 = arith.constant 0 : index
      %c32_98 = arith.constant 32 : index
      %155 = vector.load %arg9[%c0_97, %c32_98] : memref<8x128xf32, #tpu.memory_space<vmem>>, vector<8x32xf32>
      tpu.vector_store %arg9[%c0_97, %c32_98], %154 {strides = array<i32>} : memref<8x128xf32, #tpu.memory_space<vmem>>, vector<8x32xf32>,
      %c2_99 = arith.constant 2 : index
      %c0_100 = arith.constant 0 : index
      %c0_101 = arith.constant 0 : index
      %156 = vector.load %arg8[%c2_99, %c0_100, %c0_101] : memref<4x8x1xf32, #tpu.memory_space<vmem>>, vector<1x8x1xf32>
      %157 = vector.shape_cast %156 : vector<1x8x1xf32> to vector<8x1xf32>
      %158 = tpu.reciprocal %157 {approx = true} : vector<8x1xf32> -> vector<8x1xf32>
      %c0_102 = arith.constant 0 : index
      %c64_103 = arith.constant 64 : index
      %159 = vector.load %arg9[%c0_102, %c64_103] : memref<8x128xf32, #tpu.memory_space<vmem>>, vector<8x32xf32>
      %160 = vector.broadcast %158 : vector<8x1xf32> to vector<8x32xf32>
      %161 = arith.mulf %159, %160 : vector<8x32xf32>
      %c0_104 = arith.constant 0 : index
      %c64_105 = arith.constant 64 : index
      %162 = vector.load %arg9[%c0_104, %c64_105] : memref<8x128xf32, #tpu.memory_space<vmem>>, vector<8x32xf32>
      tpu.vector_store %arg9[%c0_104, %c64_105], %161 {strides = array<i32>} : memref<8x128xf32, #tpu.memory_space<vmem>>, vector<8x32xf32>,
      %c3_106 = arith.constant 3 : index
      %c0_107 = arith.constant 0 : index
      %c0_108 = arith.constant 0 : index
      %163 = vector.load %arg8[%c3_106, %c0_107, %c0_108] : memref<4x8x1xf32, #tpu.memory_space<vmem>>, vector<1x8x1xf32>
      %164 = vector.shape_cast %163 : vector<1x8x1xf32> to vector<8x1xf32>
      %165 = tpu.reciprocal %164 {approx = true} : vector<8x1xf32> -> vector<8x1xf32>
      %c0_109 = arith.constant 0 : index
      %c96_110 = arith.constant 96 : index
      %166 = vector.load %arg9[%c0_109, %c96_110] : memref<8x128xf32, #tpu.memory_space<vmem>>, vector<8x32xf32>
      %167 = vector.broadcast %165 : vector<8x1xf32> to vector<8x32xf32>
      %168 = arith.mulf %166, %167 : vector<8x32xf32>
      %c0_111 = arith.constant 0 : index
      %c96_112 = arith.constant 96 : index
      %169 = vector.load %arg9[%c0_111, %c96_112] : memref<8x128xf32, #tpu.memory_space<vmem>>, vector<8x32xf32>
      tpu.vector_store %arg9[%c0_111, %c96_112], %168 {strides = array<i32>} : memref<8x128xf32, #tpu.memory_space<vmem>>, vector<8x32xf32>,
      %c0_113 = arith.constant 0 : index
      %c0_114 = arith.constant 0 : index
      %170 = vector.load %arg9[%c0_113, %c0_114] : memref<8x128xf32, #tpu.memory_space<vmem>>, vector<8x128xf32>
      %c0_115 = arith.constant 0 : index
      %c0_116 = arith.constant 0 : index
      %c0_117 = arith.constant 0 : index
      %171 = vector.load %arg6[%c0_115, %c0_116, %c0_117] : memref<1x8x128xf32, #tpu.memory_space<vmem>>, vector<1x8x128xf32>
      %172 = vector.shape_cast %171 : vector<1x8x128xf32> to vector<8x128xf32>
      %173 = vector.shape_cast %170 : vector<8x128xf32> to vector<1x8x128xf32>
      tpu.vector_store %arg6[%c0_115, %c0_116, %c0_117], %173 {strides = array<i32>} : memref<1x8x128xf32, #tpu.memory_space<vmem>>, vector<1x8x128xf32>,
    } else {
    }
    return
  }
  func.func @transform_0(%arg0: i32, %arg1: i32, %arg2: i32) -> (i32, i32, i32) {
    %c0_i32 = arith.constant 0 : i32
    %c0_i32_0 = arith.constant 0 : i32
    return %arg0, %arg1, %c0_i32 : i32, i32, i32
  }
  func.func @transform_1(%arg0: i32, %arg1: i32, %arg2: i32) -> (i32, i32, i32) {
    %c0_i32 = arith.constant 0 : i32
    %c0_i32_0 = arith.constant 0 : i32
    return %arg0, %arg2, %c0_i32 : i32, i32, i32
  }
  func.func @transform_2(%arg0: i32, %arg1: i32, %arg2: i32) -> (i32, i32, i32) {
    %c0_i32 = arith.constant 0 : i32
    %c0_i32_0 = arith.constant 0 : i32
    return %arg0, %arg2, %c0_i32 : i32, i32, i32
  }
  func.func @transform_3(%arg0: i32, %arg1: i32, %arg2: i32) -> (i32, i32, i32) {
    %c0_i32 = arith.constant 0 : i32
    %c0_i32_0 = arith.constant 0 : i32
    return %arg0, %arg1, %c0_i32 : i32, i32, i32
  }
}

</mosaic_0001>

<bundles_post_ra>
// kernel: tpu_custom_call.1
= control target key start
LH: loop header
LB: loop body
LE: loop exit
PB: predicated region body
PF: predicated region fallthrough
CT: control target
= control target key end

     0   :  { %s2021_s0 = inlined_call_operand.hbm [shape: f32[2,8,128], index: 0, kind: input, shape index: {}]   ;;  %s2022_s1 = inlined_call_operand.hbm [shape: f32[2,8,128], index: 1, kind: input, shape index: {}]   ;;  %s2023_s2 = inlined_call_operand.hbm [shape: f32[2,8,128], index: 2, kind: input, shape index: {}]   ;;  %s2024_s3 = inlined_call_operand.hbm [shape: f32[2,8,128], index: 3, kind: output, shape index: {}]  }
   0x1   :  { %2030 = sst [smem:[#allocation18_spill]] %s2022_s1 }
   0x2   :  { %8 = vsyncpa [#allocation6], 0 }
   0x3   :  { %10 = vsyncpa [#allocation6 + $0x1], 0 }
   0x4   :  { %11 = vsyncpa [#allocation9], 0 }
   0x5   :  { %13 = vsyncpa [#allocation9 + $0x1], 0 }
   0x6   :  { %14 = vsyncpa [#allocation7], 0 }
   0x7   :  { %16 = vsyncpa [#allocation7 + $0x1], 0  ;;  %s1662_s12 = smov 0   ;;  %s1664_s13 = smov 0  }
   0x8   :  { %s1666_s14 = smov 0   ;;  %s1668_s15 = smov 0  }
   0x9   :  { %s1670_s16 = smov 0   ;;  %s1672_s17 = smov 0  }
   0xa LB: > { %2031 = sst [smem:[#allocation15_spill]] %s1625_s16  ;;  %s1693_s18 = sadd.s32 4294967295, %s1629_s17   ;;  %s1629_s17 = sphi %s1672_s17, %s22_s17   ;;  %s1625_s16 = sphi %s1670_s16, %s2052_s16   ;;  %s1621_s15 = sphi %s1668_s15, %s2051_s15   ;;  %s1617_s14 = sphi %s1666_s14, %s2055_s14   ;;  %s1613_s13 = sphi %s1664_s13, %s2054_s13   ;;  %s1609_s12 = sphi %s1662_s12, %s2053_s12  }
   0xb   : > { %s1262_s19 = sadd.s32 4294967294, %s1629_s17   ;;  %s41_s20 = sadd.s32 1, %s1625_s16 }
   0xc   : > { %s50_s21 = sadd.s32 1, %s1617_s14  ;;  %p43_p0 = scmp.ge.s32.totalorder %s41_s20, 2 }
   0xd   : > { %p57_p1 = scmp.ne.s32.totalorder %s1617_s14, %s1613_s13  ;;  %p58_p2 = scmp.eq.s32.totalorder %s1629_s17, 0 }
   0xe   : > { %p63_p3 = scmp.ne.s32.totalorder %s1613_s13, %s1609_s12  ;;  %s2057_s20 = smov (%p43_p0, %s41_s20), 0 }
   0xf   : > { %2032 = sst [smem:[#allocation16_spill]] %s2057_s20  ;;  %p1705_p4 = por %p58_p2, %p57_p1 }
  0x10   : > { %p64_p5 = scmp.eq.s32.totalorder %s1693_s18, 0  ;;  %s45_s23 = ssub.s32 %s1625_s16, %s2057_s20 }
  0x11   : > { %p145_p6 = scmp.eq.s32.totalorder %s1693_s18, 1  ;;  %p48_p7 = scmp.eq.s32.totalorder %s45_s23, 0 }
  0x12   : > { %p1713_p8 = por %p64_p5, %p63_p3  ;;  %p151_p10 = scmp.eq.s32.totalorder %s1262_s19, 1 }
  0x13   : > { %p1717_p9 = por %p145_p6, %p57_p1  ;;  %p1370_p13 = scmp.lt.s32.totalorder %s1629_s17, 2 }
  0x14   : > { %s2034_s24 = scalar_select %p1713_p8, 1, 0 }
  0x15   : > { %s2035_s25 = scalar_select %p1717_p9, 1, 0 }
  0x16   : > { %s1722_s26 = scalar_select %p48_p7, %s1617_s14, %s50_s21  }
  0x17   : > { %p1724_p11 = por %p151_p10, %p63_p3  ;;  %s171_s28 = sand.u32 1, %s1617_s14  }
  0x18   : > { %2036 = sst [smem:[#allocation17_spill]] %s1722_s26  ;;  %s1733_s29 = sshll.u32 %s171_s28, 3 }
  0x19   : > { %s2037_s27 = scalar_select %p1724_p11, 1, 0 }
  0x1a   : > { %s1736_s30 = sshll.u32 %s1625_s16, 7  ;;  %p1740_p0 = pnand %p1370_p13, %p1705_p4 }
  0x1b   : > { %s190_s5 = sand.u32 1, %s1629_s17   ;;  %s2039_s1 = sld [smem:[#allocation18_spill]] }
  0x1c   : > { %s2038_s4 = scalar_select %p1740_p0, 1, 0 }
  0x1d   : > { %s194_s9 = scalar_lea.vmem [#allocation8], %s1733_s29  ;;  %s1756_s11 = scalar_lea.sflag [#allocation9], %s190_s5 }
  0x1e   : > { %s202_s10 = sshll.u32 %s194_s9, 4  ;;  %p1762_p4 = pneg %p1740_p0  ;;  %s1753_s10 = int_to_ptr.vmem [resolvable:$true] %s202_s10 }
  0x21   : > { %s1749_s8 = scalar_lea.hbm %s2039_s1, %s1736_s30  ;;  %s1458_s6 = scalar_lea.hbm %s2039_s1, 256 }
  0x22   : > { %s1453_s19 = scalar_lea.hbm %s1749_s8, 128  ;;  %p1459_p7 = scmp.lt.u32.totalorder %s1749_s8, %s2039_s1 }
  0x23   : > { %p1454_p3 = scmp.ne.s32.totalorder %s1749_s8, %s1453_s19  ;;  %p1460_p10 = scmp.lt.u32.totalorder %s1458_s6, %s1453_s19 }
  0x24   : > { %p1462_p12 = scmp.lt.u32.totalorder %s1453_s19, %s1749_s8 }
  0x25   : > { %p1456_p5 = pnand %p1762_p4, %p1454_p3  ;;  %p1461_p13 = por %p1460_p10, %p1459_p7 }
  0x27   : > { %p1457_p6 = pneg %p1456_p5  ;;  %p1463_p1 = por %p1462_p12, %p1461_p13 }
  0x29   : > { %p1464_p2 = pnand %p1463_p1, %p1457_p6 }
  0x2b   : > { %1467 = shalt.err (!%p1464_p2)
}
  0x2c   : > { %s1468_s5 = scalar_lea.vmem %s1753_s10, 128  ;;  %s1631_s22 = smov [#allocation8]  }
  0x2d   : > { %p1469_p3 = scmp.ne.s32.totalorder %s1753_s10, %s1468_s5  ;;  %s1473_s23 = sshll.u32 %s1631_s22, 4  ;;  %s1474_s23 = int_to_ptr.vmem [resolvable:$false] %s1473_s23 }
  0x2e   : > { %s1475_s7 = scalar_lea.vmem %s1474_s23, 256  ;;  %p1476_p9 = scmp.lt.s32.totalorder %s1753_s10, %s1474_s23 }
  0x2f   : > { %p1471_p5 = pnand %p1469_p3, %p1762_p4  ;;  %p1477_p8 = scmp.lt.s32.totalorder %s1475_s7, %s1468_s5 }
  0x31   : > { %p1472_p11 = pneg %p1471_p5  ;;  %p1478_p7 = por %p1477_p8, %p1476_p9 }
  0x33   : > { %p1479_p10 = pnand %p1478_p7, %p1472_p11 }
  0x35   : > { %1482 = shalt.err (!%p1479_p10)
}
  0x36   : > { %1362 = dma.hbm_to_vmem [thread:$0]  (!%p1740_p0), %s1749_s8, 128, %s1753_s10, %s1756_s11  }
  0x37   : > { %p2041_p12 = scmp.lt.s32.totalorder %s1629_s17, 3  ;;  %p2042_p1 = scmp.ge.s32.totalorder %s1629_s17, 1 }
  0x38   : > { %s1798_s5 = scalar_lea.hbm %s2021_s0, %s1736_s30  ;;  %s175_s22 = scalar_lea.vmem [#allocation5], %s1733_s29 }
  0x39   : > { %p1790_p2 = pnand %p2042_p1, %p2041_p12  ;;  %s183_s23 = sshll.u32 %s175_s22, 4  ;;  %s1801_s23 = int_to_ptr.vmem [resolvable:$true] %s183_s23 }
  0x3a   : > { %s1807_s7 = scalar_lea.hbm %s2023_s2, %s1736_s30  ;;  %s172_s1 = scalar_lea.sflag [#allocation6], %s171_s28 }
  0x3b   : > { %s2043_s19 = scalar_select %p1790_p2, 1, 0 }
  0x3c   : > { %s1483_s20 = scalar_lea.hbm %s1798_s5, 128  ;;  %s1488_s16 = scalar_lea.hbm %s2021_s0, 256 }
  0x3d   : > { %p1484_p8 = scmp.ne.s32.totalorder %s1798_s5, %s1483_s20  ;;  %p1489_p6 = scmp.lt.u32.totalorder %s1798_s5, %s2021_s0 }
  0x3e   : > { %p1490_p13 = scmp.lt.u32.totalorder %s1488_s16, %s1483_s20  ;;  %p1492_p5 = scmp.lt.u32.totalorder %s1483_s20, %s1798_s5 }
  0x3f   : > { %p1486_p9 = pnand %p1484_p8, %p1762_p4 }
  0x40   : > { %p1491_p3 = por %p1490_p13, %p1489_p6 }
  0x41   : > { %p1487_p11 = pneg %p1486_p9 }
  0x42   : > { %p1493_p7 = por %p1492_p5, %p1491_p3 }
  0x44   : > { %p1494_p10 = pnand %p1493_p7, %p1487_p11 }
  0x46   : > { %1497 = shalt.err (!%p1494_p10)
}
  0x47   : > { %s1498_s28 = scalar_lea.vmem %s1801_s23, 128  ;;  %s1632_s30 = smov [#allocation5]  }
  0x48   : > { %p1499_p12 = scmp.ne.s32.totalorder %s1801_s23, %s1498_s28  ;;  %s1503_s8 = sshll.u32 %s1632_s30, 4  ;;  %s1504_s8 = int_to_ptr.vmem [resolvable:$false] %s1503_s8 }
  0x49   : > { %s1505_s26 = scalar_lea.vmem %s1504_s8, 256  ;;  %p1506_p9 = scmp.lt.s32.totalorder %s1801_s23, %s1504_s8 }
  0x4a   : > { %p1501_p1 = pnand %p1499_p12, %p1762_p4  ;;  %p1507_p2 = scmp.lt.s32.totalorder %s1505_s26, %s1498_s28 }
  0x4c   : > { %p1502_p8 = pneg %p1501_p1  ;;  %p1508_p6 = por %p1507_p2, %p1506_p9 }
  0x4e   : > { %p1509_p13 = pnand %p1508_p6, %p1502_p8 }
  0x50   : > { %1512 = shalt.err (!%p1509_p13)
}
  0x51   : > { %1359 = dma.hbm_to_vmem [thread:$0]  (!%p1740_p0), %s1798_s5, 128, %s1801_s23, %s172_s1  }
  0x52   : > { %s213_s16 = scalar_lea.vmem [#allocation10], %s1733_s29  ;;  %s1513_s10 = scalar_lea.hbm %s1807_s7, 128 }
  0x53   : > { %s221_s20 = sshll.u32 %s213_s16, 4  ;;  %p1514_p11 = scmp.ne.s32.totalorder %s1807_s7, %s1513_s10  ;;  %s222_s20 = int_to_ptr.vmem [resolvable:$true] %s221_s20 }
  0x54   : > { %s1518_s22 = scalar_lea.hbm %s2023_s2, 256  ;;  %p1519_p5 = scmp.lt.u32.totalorder %s1807_s7, %s2023_s2 }
  0x55   : > { %p1516_p2 = pnand %p1514_p11, %p1762_p4  ;;  %p1520_p7 = scmp.lt.u32.totalorder %s1518_s22, %s1513_s10 }
  0x56   : > { %p1522_p12 = scmp.lt.u32.totalorder %s1513_s10, %s1807_s7 }
  0x57   : > { %p1517_p3 = pneg %p1516_p2  ;;  %p1521_p10 = por %p1520_p7, %p1519_p5 }
  0x59   : > { %p1523_p1 = por %p1522_p12, %p1521_p10 }
  0x5b   : > { %p1524_p8 = pnand %p1523_p1, %p1517_p3 }
  0x5d   : > { %1527 = shalt.err (!%p1524_p8)
}
  0x5e   : > { %s1528_s1 = scalar_lea.vmem %s222_s20, 128  ;;  %s1633_s29 = smov [#allocation10]  }
  0x5f   : > { %p1529_p9 = scmp.ne.s32.totalorder %s222_s20, %s1528_s1  ;;  %s1533_s5 = sshll.u32 %s1633_s29, 4  ;;  %s1534_s5 = int_to_ptr.vmem [resolvable:$false] %s1533_s5 }
  0x60   : > { %s1535_s23 = scalar_lea.vmem %s1534_s5, 256  ;;  %p1536_p11 = scmp.lt.s32.totalorder %s222_s20, %s1534_s5 }
  0x61   : > { %p1531_p6 = pnand %p1529_p9, %p1762_p4  ;;  %p1537_p2 = scmp.lt.s32.totalorder %s1535_s23, %s1528_s1 }
  0x63   : > { %p1532_p13 = pneg %p1531_p6  ;;  %p1538_p0 = por %p1537_p2, %p1536_p11 }
  0x65   : > { %p1539_p5 = pnand %p1538_p0, %p1532_p13 }
  0x67   : > { %1542 = shalt.err (!%p1539_p5)
}
  0x68   : > { %p2044_p7 = scmp.ne.s32.totalorder %s2038_s4, 0  ;;  %p2045_p3 = scmp.ne.s32.totalorder %s2043_s19, 0 }
  0x69   : > { %s1854_s21 = sand.u32 (!%p2045_p3), 1, %s1613_s13   ;;  %p2046_p0 = scmp.ne.s32.totalorder (!%p2045_p3), %s2034_s24, 0 }
  0x6a   : > { %1365 = dma.hbm_to_vmem [thread:$0]  (!%p2044_p7), %s1807_s7, 128, %s222_s20, %s1756_s11  }
  0x6b   : > { %230 = sbr.rel (%p2045_p3) target bundleno = 1543 (0x607), region = 32  ;;  %s1857_s8 = sshll.u32 (!%p2045_p3), %s1854_s21, 3 }
  0x6c   : > { %s233_s26 = scalar_lea.sflag (!%p2045_p3), [#allocation6], %s1854_s21  ;;  %s236_s16 = scalar_lea.vmem (!%p2045_p3), [#allocation5], %s1857_s8 }
  0x72   : > { %1596 = dma.done.wait (%p2046_p0), %s233_s26, 128  }
  0x73   : > { %1598 = vsyncadd (%p2046_p0), %s233_s26, 4294967168  ;;  %s241_s4 = sand.u32 1, %s1693_s18   ;;  %s245_s19 = scalar_lea.vmem [#allocation8], %s1857_s8 }
  0x74   : > { %s242_s11 = scalar_lea.sflag [#allocation9], %s241_s4 }
  0x75   : > { %1600 = dma.done.wait (%p2046_p0), %s242_s11, 256  }
  0x76   : > { %1602 = vsyncadd (%p2046_p0), %s242_s11, 4294967040  ;;  %v1634_v0 = vmov 0.0   ;;  %vm1635_vm0 = vmmov 0   ;;  %vm305_vm1 = vcmask 261120   ;;  %v303_v1 = vld [vmem:[%s245_s19] sm:$0xff]  ;;  %v301_v2 = vld [vmem:[%s236_s16] sm:$0xff] }
  0x77   : > { %1308 = vmatprep.subr.mxu0 %v1634_v0  ;;  %300 = vst [vmem:[#allocation4] sm:$0xff] %v1634_v0  ;;  %1310 = vmatprep.mubr.msk.f32.mxu0 %vm1635_vm0, %v1634_v0  ;;  %v302_v3 = vmul.f32 0.17677669, %v301_v2  ;;  %vm291_vm2 = vcmask 7168   ;;  %v1636_v4 = vmov -inf   ;;  %vm383_vm3 = vcmask 64512  }
  0x78   : > { %1313 = vmatprep.subr.mxu1 %v1634_v0  ;;  %1315 = vmatprep.mubr.msk.f32.mxu1 %vm1635_vm0, %v1634_v0  ;;  %292 = vst.msk [vmem:[#allocation2] sm:$0xff] %vm291_vm2, %v1636_v4  ;;  %293 = vst.msk [vmem:[#allocation2 + $0x8] sm:$0xff] %vm291_vm2, %v1636_v4  ;;  %v1637_v8 = vmov 0   ;;  %s1638_s18 = smov 96   ;;  %s1639_s24 = smov 64   ;;  %vm683_vm4 = vcmask 523520  }
  0x79   : > { %1309 = vmatpush3.xpose.msk.msra.mxu0 %vm305_vm1, %v303_v1  ;;  %294 = vst.msk [vmem:[#allocation2 + $0x10] sm:$0xff] %vm291_vm2, %v1636_v4  ;;  %295 = vst.msk [vmem:[#allocation2 + $0x18] sm:$0xff] %vm291_vm2, %v1636_v4  ;;  %1427 = vset.pattern.permute.xlu0 %v1637_v8  ;;  %s1640_s7 = smov 32   ;;  %s254_s20 = scalar_lea.vmem [#allocation10], %s1857_s8  ;;  %vm877_vm5 = vcmask 785920   ;;  %vm1071_vm6 = vcmask 1048320  }
  0x7a   : > { %1323 = vmatprep.subr.mxu0 %v1634_v0  ;;  %296 = vst.msk [vmem:[#allocation3] sm:$0xff] %vm291_vm2, %v1634_v0  ;;  %297 = vst.msk [vmem:[#allocation3 + $0x8] sm:$0xff] %vm291_vm2, %v1634_v0  ;;  %1428 = vset.pattern.permute.xlu1 %v1637_v8  ;;  %v1904_v13 = vld [vmem:[%s254_s20] sm:$0xff]  ;;  %s1289_s10 = sshll.u32 %s1621_s15, 7  ;;  %s286_s6 = scalar_lea.vmem [#allocation11], %s1857_s8 }
  0x7b   : > { %298 = vst.msk [vmem:[#allocation3 + $0x10] sm:$0xff] %vm291_vm2, %v1634_v0  ;;  %299 = vst.msk [vmem:[#allocation3 + $0x18] sm:$0xff] %vm291_vm2, %v1634_v0  ;;  %492 = vrot.lane.b32.xlu1 %v303_v1, %s1638_s18  ;;  %1314 = vmatpush3.msra.mxu1 %v1904_v13  ;;  %s1133_s9 = sshll.u32 %s286_s6, 4  ;;  %s1972_s30 = scalar_lea.hbm %s2024_s3, %s1289_s10  ;;  %s1974_s9 = int_to_ptr.vmem [resolvable:$true] %s1133_s9 }
  0x7c   : > { %1311 = vmatmul.mubr.msk.f32.vlgmr.msra.gmra.mrb[0].mxu0 %vm305_vm1, %v302_v3  ;;  %1318 = vmatprep.subr.mxu1 %v1634_v0  ;;  %s1119_s1 = scalar_lea.sflag [#allocation7], %s1854_s21  ;;  %s1543_s29 = scalar_lea.vmem %s1974_s9, 128 }
  0x7d   : > { %1325 = vmatprep.mubr.msk.f32.mxu0 %vm1635_vm0, %v1634_v0  ;;  %p1544_p4 = scmp.ne.s32.totalorder %s1974_s9, %s1543_s29  ;;  %p2047_p10 = scmp.ne.s32.totalorder %s2035_s25, 0 }
  0x7e   : > { %s1641_s15 = smov [#allocation11]  }
  0x7f   : > { %490 = vrot.lane.b32.xlu1 %v302_v3, %s1638_s18  ;;  %v382_v9 = vld [vmem:[#allocation2] sm:$0xff]  ;;  %v569_v36 = vld [vmem:[#allocation2 + $0x8] sm:$0xff]  ;;  %p1545_p12 = pnand %p1544_p4, %p2047_p10  ;;  %s1547_s5 = sshll.u32 %s1641_s15, 4  ;;  %s1548_s5 = int_to_ptr.vmem [resolvable:$false] %s1547_s5 }
  0x80   : > { %v764_v39 = vld [vmem:[#allocation2 + $0x10] sm:$0xff]  ;;  %v1927_v43 = vld [vmem:[#allocation2 + $0x18] sm:$0xff]  ;;  %s1549_s23 = scalar_lea.vmem %s1548_s5, 256  ;;  %p1550_p8 = scmp.lt.s32.totalorder %s1974_s9, %s1548_s5 }
  0x81   : > { %p1546_p1 = pneg %p1545_p12  ;;  %p1551_p9 = scmp.lt.s32.totalorder %s1549_s23, %s1543_s29 }
  0x83   : > { %687 = vrot.lane.b32.xlu1 %v303_v1, %s1639_s24  ;;  %p1552_p6 = por %p1551_p9, %p1550_p8 }
  0x85   : > { %p1553_p13 = pnand %p1552_p6, %p1546_p1 }
  0x87   : > { %685 = vrot.lane.b32.xlu1 %v302_v3, %s1639_s24 }
  0x8b   : > { %881 = vrot.lane.b32.xlu1 %v303_v1, %s1640_s7 }
  0x8f   : > { %879 = vrot.lane.b32.xlu1 %v302_v3, %s1640_s7 }
  0xed   : > { %v493_v14 = vpop.permute.xlu1 %492 }
  0xf1   : > { %v491_v17 = vpop.permute.xlu1 %490 }
  0xf5   : > { %v688_v19 = vpop.permute.xlu1 %687 }
  0xf9   : > { %v686_v20 = vpop.permute.xlu1 %685 }
  0xfd   : > { %v882_v22 = vpop.permute.xlu1 %881 }
 0x101   : > { %v880_v23 = vpop.permute.xlu1 %879 }
 0x14f   : > { %v378_v5 = vpop.f32.mrb[0].mxu0 }
 0x150   : > { %v1312_v6 = vpop.f32.mrb[1].mxu0  ;;  %v384_v7 = vsel %vm383_vm3, %v378_v5, -inf }
 0x151   : > { %385 = vmax.xlane.f32.xlu0 %v384_v7 }
 0x1de   : > { %v386_v10 = vpop.xlane.xlu0 %385 }
 0x1df   : > { %v387_v11 = vmax.f32 %v382_v9, %v386_v10 }
 0x1e1   : > { %v388_v12 = vsub.f32 %v382_v9, %v387_v11  ;;  %407 = vst.msk [vmem:[#allocation2] sm:$0xff] %vm291_vm2, %v387_v11  ;;  %393 = vperm.xlu0 %1427, %v387_v11  }
 0x1e3   : > { %v389_v35 = vmul.f32 1.442695, %v388_v12  ;;  %v399_v12 = vld [vmem:[#allocation3] sm:$0xff] }
 0x260   : > { %v394_v15 = vpop.permute.xlu0 %393 }
 0x261   : > { %v396_v16 = vsub.f32 %v378_v5, %v394_v15 }
 0x263   : > { %v397_v18 = vmul.f32 1.442695, %v396_v16  ;;  %v586_v16 = vld [vmem:[#allocation3 + $0x8] sm:$0xff] }
 0x265   : > { %1429 = vpow2.f32 %v397_v18 }
 0x266   : > { %1431 = vpow2.f32 %v389_v35 }
 0x26f   : > { %v1430_v21 = vpop.eup %1429 }
 0x270   : > { %1316 = vmatmul.mubr.msk.f32.vlgmr.msra.gmra.mrb[0].mxu1 %vm383_vm3, %v1430_v21  ;;  %v1432_v47 = vpop.eup %1431  ;;  %v401_v49 = vsel %vm383_vm3, %v1430_v21, 0.0 }
 0x271   : > { %1319 = vmatpush3.xpose.msk.msra.mxu1 %vm305_vm1, %v493_v14  ;;  %1320 = vmatprep.mubr.msk.f32.mxu1 %vm1635_vm0, %v1634_v0 }
 0x272   : > { %1328 = vmatprep.subr.mxu1 %v1634_v0 }
 0x274   : > { %1321 = vmatmul.mubr.msk.f32.vlgmr.msra.gmra.mrb[2].mxu1 %vm305_vm1, %v491_v17 }
 0x275   : > { %1329 = vmatpush3.xpose.msk.msra.mxu1 %vm305_vm1, %v688_v19  ;;  %1330 = vmatprep.mubr.msk.f32.mxu1 %vm1635_vm0, %v1634_v0  ;;  %v781_v19 = vld [vmem:[#allocation3 + $0x10] sm:$0xff] }
 0x276   : > { %1338 = vmatprep.subr.mxu1 %v1634_v0 }
 0x278   : > { %1331 = vmatmul.mubr.msk.f32.vlgmr.msra.gmra.mrb[4].mxu1 %vm305_vm1, %v686_v20 }
 0x279   : > { %1339 = vmatpush3.xpose.msk.msra.mxu1 %vm305_vm1, %v882_v22  ;;  %1340 = vmatprep.mubr.msk.f32.mxu1 %vm1635_vm0, %v1634_v0 }
 0x27c   : > { %1341 = vmatmul.mubr.msk.f32.vlgmr.msra.gmra.mrb[6].mxu1 %vm305_vm1, %v880_v23 }
 0x343   : > { %v477_v24 = vpop.f32.mrb[0].mxu1 }
 0x344   : > { %v1317_v25 = vpop.f32.mrb[1].mxu1 }
 0x347   : > { %v564_v26 = vpop.f32.mrb[2].mxu1 }
 0x348   : > { %v1322_v27 = vpop.f32.mrb[3].mxu1  ;;  %v570_v28 = vsel %vm383_vm3, %v564_v26, -inf }
 0x349   : > { %571 = vmax.xlane.f32.xlu1 %v570_v28 }
 0x34b   : > { %v759_v29 = vpop.f32.mrb[4].mxu1 }
 0x34c   : > { %v765_v30 = vsel %vm383_vm3, %v759_v29, -inf  ;;  %v1332_v31 = vpop.f32.mrb[5].mxu1 }
 0x34d   : > { %766 = vmax.xlane.f32.xlu0 %v765_v30 }
 0x34f   : > { %v953_v32 = vpop.f32.mrb[6].mxu1 }
 0x350   : > { %v959_v33 = vsel %vm383_vm3, %v953_v32, -inf  ;;  %v1342_v34 = vpop.f32.mrb[7].mxu1 }
 0x351   : > { %960 = vmax.xlane.f32.xlu1 %v959_v33 }
 0x3d6   : > { %v572_v37 = vpop.xlane.xlu1 %571 }
 0x3d7   : > { %v573_v38 = vmax.f32 %v569_v36, %v572_v37 }
 0x3d9   : > { %v574_v40 = vsub.f32 %v569_v36, %v573_v38  ;;  %593 = vst.msk [vmem:[#allocation2 + $0x8] sm:$0xff] %vm291_vm2, %v573_v38  ;;  %579 = vperm.xlu1 %1428, %v573_v38  }
 0x3da   : > { %v767_v41 = vpop.xlane.xlu0 %766 }
 0x3db   : > { %v768_v42 = vmax.f32 %v764_v39, %v767_v41  ;;  %v575_v7 = vmul.f32 1.442695, %v574_v40 }
 0x3dd   : > { %v769_v44 = vsub.f32 %v764_v39, %v768_v42  ;;  %788 = vst.msk [vmem:[#allocation2 + $0x10] sm:$0xff] %vm291_vm2, %v768_v42  ;;  %774 = vperm.xlu0 %1427, %v768_v42   ;;  %595 = vrot.lane.b32.xlu1 %v1904_v13, %s1638_s18 }
 0x3de   : > { %v961_v45 = vpop.xlane.xlu1 %960 }
 0x3df   : > { %v962_v46 = vmax.f32 %v1927_v43, %v961_v45  ;;  %v770_v9 = vmul.f32 1.442695, %v769_v44 }
 0x3e1   : > { %v963_v48 = vsub.f32 %v1927_v43, %v962_v46  ;;  %982 = vst.msk [vmem:[#allocation2 + $0x18] sm:$0xff] %vm291_vm2, %v962_v46  ;;  %968 = vperm.xlu1 %1428, %v962_v46   ;;  %484 = vperm.xlu0 %1427, %v1432_v47  }
 0x3e5   : > { %789 = vrot.lane.b32.xlu1 %v1904_v13, %s1639_s24 }
 0x3e9   : > { %983 = vrot.lane.b32.xlu1 %v1904_v13, %s1640_s7  ;;  %v400_v13 = vmul.f32 %v1432_v47, %v399_v12 }
 0x40d   : > { %402 = vadd.xlane.f32.xlu1 %v401_v49 }
 0x458   : > { %v580_v50 = vpop.permute.xlu1 %579 }
 0x459   : > { %v582_v51 = vsub.f32 %v564_v26, %v580_v50 }
 0x45b   : > { %v583_v52 = vmul.f32 1.442695, %v582_v51 }
 0x45c   : > { %v775_v53 = vpop.permute.xlu0 %774  ;;  %v596_v54 = vpop.permute.xlu1 %595 }
 0x45d   : > { %1433 = vpow2.f32 %v583_v52  ;;  %v777_v55 = vsub.f32 %v759_v29, %v775_v53  ;;  %1324 = vmatpush3.msra.mxu0 %v596_v54 }
 0x45e   : > { %1333 = vmatprep.subr.mxu0 %v1634_v0 }
 0x45f   : > { %v778_v56 = vmul.f32 1.442695, %v777_v55 }
 0x460   : > { %v969_v57 = vpop.permute.xlu1 %968  ;;  %v485_v58 = vpop.permute.xlu0 %484 }
 0x461   : > { %1435 = vpow2.f32 %v778_v56  ;;  %v971_v59 = vsub.f32 %v953_v32, %v969_v57  ;;  %v487_v60 = vmul.f32 0.0, %v485_v58 }
 0x463   : > { %v972_v61 = vmul.f32 1.442695, %v971_v59  ;;  %v488_v62 = vadd.f32 %v487_v60, %v477_v24  ;;  %v975_v24 = vld [vmem:[#allocation3 + $0x18] sm:$0xff] }
 0x464   : > { %v790_v63 = vpop.permute.xlu1 %789 }
 0x465   : > { %1437 = vpow2.f32 %v972_v61  ;;  %489 = vst.msk [vmem:[#allocation4] sm:$0xff] %vm305_vm1, %v488_v62 }
 0x466   : > { %1439 = vpow2.f32 %v575_v7 }
 0x467   : > { %v1434_v1 = vpop.eup %1433  ;;  %1441 = vpow2.f32 %v770_v9 }
 0x468   : > { %1326 = vmatmul.mubr.msk.f32.vlgmr.msra.gmra.mrb[2].mxu0 %vm383_vm3, %v1434_v1  ;;  %v588_v2 = vsel %vm383_vm3, %v1434_v1, 0.0  ;;  %v984_v3 = vpop.permute.xlu1 %983 }
 0x469   : > { %589 = vadd.xlane.f32.xlu0 %v588_v2  ;;  %1334 = vmatpush3.msra.mxu0 %v790_v63 }
 0x46a   : > { %1335 = vmatprep.mubr.msk.f32.mxu0 %vm1635_vm0, %v1634_v0  ;;  %1343 = vmatprep.subr.mxu0 %v1634_v0 }
 0x46b   : > { %v1436_v4 = vpop.eup %1435 }
 0x46c   : > { %1336 = vmatmul.mubr.msk.f32.vlgmr.msra.gmra.mrb[4].mxu0 %vm383_vm3, %v1436_v4  ;;  %v783_v5 = vsel %vm383_vm3, %v1436_v4, 0.0  ;;  %v671_v44 = vld [vmem:[#allocation4] sm:$0xff] }
 0x46d   : > { %784 = vadd.xlane.f32.xlu1 %v783_v5  ;;  %1344 = vmatpush3.msra.mxu0 %v984_v3 }
 0x46e   : > { %1345 = vmatprep.mubr.msk.f32.mxu0 %vm1635_vm0, %v1634_v0  ;;  %v964_v0 = vmul.f32 1.442695, %v963_v48 }
 0x46f   : > { %v1438_v6 = vpop.eup %1437 }
 0x470   : > { %1346 = vmatmul.mubr.msk.f32.vlgmr.msra.gmra.mrb[6].mxu0 %vm383_vm3, %v1438_v6  ;;  %v977_v8 = vsel %vm383_vm3, %v1438_v6, 0.0  ;;  %v1440_v10 = vpop.eup %1439  ;;  %1443 = vpow2.f32 %v964_v0 }
 0x471   : > { %978 = vadd.xlane.f32.xlu0 %v977_v8  ;;  %v1442_v11 = vpop.eup %1441  ;;  %v587_v17 = vmul.f32 %v1440_v10, %v586_v16 }
 0x472   : > { %v782_v21 = vmul.f32 %v1442_v11, %v781_v19 }
 0x47a   : > { %v1444_v22 = vpop.eup %1443 }
 0x47b   : > { %v976_v26 = vmul.f32 %v1444_v22, %v975_v24 }
 0x47e   : > { %674 = vperm.xlu1 %1428, %v1440_v10  }
 0x482   : > { %868 = vperm.xlu1 %1428, %v1442_v11  }
 0x49a   : > { %v403_v14 = vpop.xlane.xlu1 %402 }
 0x49b   : > { %v404_v15 = vadd.f32 %v403_v14, %v400_v13 }
 0x49d   : > { %406 = vst.msk [vmem:[#allocation3] sm:$0xff] %vm291_vm2, %v404_v15 }
 0x4a4   : > { %v1076_v29 = vld [vmem:[#allocation3] sm:$0xff] }
 0x4a5   : > { %1445 = vrcp.f32 %v1076_v29 }
 0x4af   : > { %v1446_v37 = vpop.eup %1445 }
 0x4f6   : > { %v590_v18 = vpop.xlane.xlu0 %589 }
 0x4f7   : > { %v591_v20 = vadd.f32 %v590_v18, %v587_v17 }
 0x4f9   : > { %592 = vst.msk [vmem:[#allocation3 + $0x8] sm:$0xff] %vm291_vm2, %v591_v20 }
 0x4fa   : > { %v785_v23 = vpop.xlane.xlu1 %784 }
 0x4fb   : > { %v786_v25 = vadd.f32 %v785_v23, %v782_v21 }
 0x4fd   : > { %787 = vst.msk [vmem:[#allocation3 + $0x10] sm:$0xff] %vm291_vm2, %v786_v25 }
 0x4fe   : > { %v979_v27 = vpop.xlane.xlu0 %978  ;;  %v675_v43 = vpop.permute.xlu1 %674 }
 0x4ff   : > { %v980_v28 = vadd.f32 %v979_v27, %v976_v26  ;;  %v677_v45 = vmul.f32 %v675_v43, %v671_v44 }
 0x500   : > { %v1086_v30 = vld [vmem:[#allocation3 + $0x8] sm:$0xff] }
 0x501   : > { %981 = vst.msk [vmem:[#allocation3 + $0x18] sm:$0xff] %vm291_vm2, %v980_v28  ;;  %1447 = vrcp.f32 %v1086_v30 }
 0x502   : > { %v869_v48 = vpop.permute.xlu1 %868 }
 0x504   : > { %v1096_v31 = vld [vmem:[#allocation3 + $0x10] sm:$0xff] }
 0x505   : > { %1449 = vrcp.f32 %v1096_v31 }
 0x508   : > { %v1106_v34 = vld [vmem:[#allocation3 + $0x18] sm:$0xff] }
 0x509   : > { %1451 = vrcp.f32 %v1106_v34 }
 0x50b   : > { %v1448_v40 = vpop.eup %1447 }
 0x50f   : > { %v1450_v41 = vpop.eup %1449 }
 0x513   : > { %v1452_v42 = vpop.eup %1451 }
 0x53b   : > { %v667_v32 = vpop.f32.mrb[2].mxu0 }
 0x53c   : > { %v1327_v33 = vpop.f32.mrb[3].mxu0  ;;  %679 = vrot.lane.b32.xlu0 %v667_v32, %s1640_s7 }
 0x53f   : > { %v861_v35 = vpop.f32.mrb[4].mxu0 }
 0x540   : > { %v1337_v36 = vpop.f32.mrb[5].mxu0  ;;  %873 = vrot.lane.b32.xlu1 %v861_v35, %s1639_s24  ;;  %1062 = vperm.xlu0 %1427, %v1444_v22  }
 0x543   : > { %v1055_v38 = vpop.f32.mrb[6].mxu0 }
 0x544   : > { %v1347_v39 = vpop.f32.mrb[7].mxu0  ;;  %1067 = vrot.lane.b32.xlu1 %v1055_v38, %s1638_s18  ;;  %1081 = vperm.xlu0 %1427, %v1446_v37  }
 0x548   : > { %1091 = vperm.xlu1 %1428, %v1448_v40   ;;  %1101 = vperm.xlu0 %1427, %v1450_v41  }
 0x54c   : > { %1111 = vperm.xlu1 %1428, %v1452_v42  }
 0x5ae   : > { %v680_v46 = vpop.permute.xlu0 %679 }
 0x5af   : > { %v682_v47 = vadd.f32 %v680_v46, %v677_v45 }
 0x5b1   : > { %684 = vst.msk [vmem:[#allocation4] sm:$0xff] %vm683_vm4, %v682_v47 }
 0x5b2   : > { %v874_v51 = vpop.permute.xlu1 %873 }
 0x5b6   : > { %v1068_v56 = vpop.permute.xlu1 %1067 }
 0x5b8   : > { %v865_v49 = vld [vmem:[#allocation4] sm:$0xff] }
 0x5b9   : > { %v871_v50 = vmul.f32 %v869_v48, %v865_v49 }
 0x5bb   : > { %v876_v52 = vadd.f32 %v874_v51, %v871_v50 }
 0x5bd   : > { %878 = vst.msk [vmem:[#allocation4] sm:$0xff] %vm877_vm5, %v876_v52 }
 0x5bf   : > { %v1063_v54 = vpop.permute.xlu0 %1062 }
 0x5c3   : > { %v1082_v59 = vpop.permute.xlu0 %1081 }
 0x5c4   : > { %v1059_v53 = vld [vmem:[#allocation4] sm:$0xff] }
 0x5c5   : > { %v1065_v55 = vmul.f32 %v1063_v54, %v1059_v53 }
 0x5c7   : > { %v1070_v57 = vadd.f32 %v1068_v56, %v1065_v55  ;;  %v1092_v61 = vpop.permute.xlu1 %1091  ;;  %v1102_v2 = vpop.permute.xlu0 %1101 }
 0x5c9   : > { %1072 = vst.msk [vmem:[#allocation4] sm:$0xff] %vm1071_vm6, %v1070_v57 }
 0x5cb   : > { %v1112_v4 = vpop.permute.xlu1 %1111 }
 0x5d0   : > { %v1078_v58 = vld [vmem:[#allocation4] sm:$0xff] }
 0x5d1   : > { %v1084_v60 = vmul.f32 %v1082_v59, %v1078_v58 }
 0x5d3   : > { %1085 = vst.msk [vmem:[#allocation4] sm:$0xff] %vm305_vm1, %v1084_v60 }
 0x5da   : > { %v1088_v62 = vld [vmem:[#allocation4] sm:$0xff] }
 0x5db   : > { %v1094_v63 = vmul.f32 %v1092_v61, %v1088_v62 }
 0x5dd   : > { %1095 = vst.msk [vmem:[#allocation4] sm:$0xff] %vm683_vm4, %v1094_v63 }
 0x5e4   : > { %v1098_v1 = vld [vmem:[#allocation4] sm:$0xff] }
 0x5e5   : > { %v1104_v3 = vmul.f32 %v1102_v2, %v1098_v1 }
 0x5e7   : > { %1105 = vst.msk [vmem:[#allocation4] sm:$0xff] %vm877_vm5, %v1104_v3 }
 0x5ee   : > { %v1108_v5 = vld [vmem:[#allocation4] sm:$0xff] }
 0x5ef   : > { %v1114_v6 = vmul.f32 %v1112_v4, %v1108_v5 }
 0x5f1   : > { %1115 = vst.msk [vmem:[#allocation4] sm:$0xff] %vm1071_vm6, %v1114_v6 }
 0x5f8   : > { %v1116_v7 = vld [vmem:[#allocation4] sm:$0xff] }
 0x5f9   : > { %1117 = vst [vmem:[%s286_s6] sm:$0xff] %v1116_v7 }
 0x5fa   : > { %1556 = shalt.err (!%p1553_p13)
}
 0x5fb   : > { %s1557_s21 = scalar_lea.hbm %s1972_s30, 128  ;;  %s1561_s16 = scalar_lea.hbm %s2024_s3, 256 }
 0x5fc   : > { %p1558_p11 = scmp.ne.s32.totalorder %s1972_s30, %s1557_s21  ;;  %p1562_p7 = scmp.lt.u32.totalorder %s1972_s30, %s2024_s3 }
 0x5fd   : > { %p1563_p3 = scmp.lt.u32.totalorder %s1561_s16, %s1557_s21  ;;  %p1565_p4 = scmp.lt.u32.totalorder %s1557_s21, %s1972_s30 }
 0x5fe   : > { %p1559_p2 = pnand %p1558_p11, %p2047_p10 }
 0x5ff   : > { %p1564_p0 = por %p1563_p3, %p1562_p7 }
 0x600   : > { %p1560_p5 = pneg %p1559_p2 }
 0x601   : > { %p1566_p12 = por %p1565_p4, %p1564_p0 }
 0x603   : > { %p1567_p1 = pnand %p1566_p12, %p1560_p5 }
 0x605   : > { %1570 = shalt.err (!%p1567_p1)
}
 0x606   : > { %1354 = dma.vmem_to_hbm [thread:$0]  (%p2047_p10), %s1974_s9, 128, %s1972_s30, %s1119_s1  }
 0x607 PF: > { %s1145_s19 = sand.u32 1, %s1609_s12   ;;  %p2048_p8 = scmp.ne.s32.totalorder %s2037_s27, 0 }
 0x608   : > { %p2049_p9 = scmp.ge.s32.totalorder %s1629_s17, 2  ;;  %s1146_s18 = scalar_lea.sflag [#allocation7], %s1145_s19 }
 0x60a   : > { %p1367_p6 = pnand %p2049_p9, %p2048_p8 }
 0x60c   : > { %1604 = dma.done.wait (!%p1367_p6), %s1146_s18, 128  }
 0x60d   : > { %1606 = vsyncadd (!%p1367_p6), %s1146_s18, 4294967168  ;;  %s22_s17 = sadd.s32 1, %s1629_s17   ;;  %s2050_s25 = sld [smem:[#allocation17_spill]] }
 0x60e   : > { %p19_p13 = scmp.ge.s32.totalorder %s22_s17, 4   ;;  %s2051_s15 = sld [smem:[#allocation15_spill]] }
 0x60f   : > { %s2052_s16 = sld [smem:[#allocation16_spill]]  ;;  %s2053_s12 = smov %s1613_s13 }
 0x610   : > { %s2054_s13 = smov %s1617_s14  ;;  %21 = sbr.rel (!%p19_p13) target bundleno = 10 (0xa), region = 115 }
 0x613   : > { %s2055_s14 = smov %s2050_s25 }
 0x617   :  { %1151 = vsyncpa [#allocation6], 1 }
 0x618   :  { %1153 = vsyncpa [#allocation6 + $0x1], 1 }
 0x619   :  { %1154 = vsyncpa [#allocation9], 1 }
 0x61a   :  { %1156 = vsyncpa [#allocation9 + $0x1], 1 }
 0x61b   :  { %1157 = vsyncpa [#allocation7], 1 }
 0x61c   :  { %1159 = vsyncpa [#allocation7 + $0x1], 1 }

</bundles_post_ra>
